<compile_context>
chip_gen: v6e
topology: v6e:2x2x1
jax: 0.10.0
libtpu: 0.0.40
codegen_flags: <defaults>
</compile_context>

<pallas_src>
import functools

import jax
import jax.numpy as jnp
from jax.experimental import pallas as pl


# ---------------------------------------------------------------------------
# Packed parameter slab layout (f32, shape (SLAB_ROWS, 128), zero padded).
# ---------------------------------------------------------------------------
LANES = 128
HIDDEN = 16
W1_OFF = 0                    # rows 0..1     : w1 (2, 16)  in cols [0:16]
B1_OFF = 2                    # row  2        : b1 (16,)    in cols [0:16]
W2_OFF = 8                    # rows 8..135   : w2 padded to (128, 128)
B2_OFF = W2_OFF + LANES       # row  136      : b2
W3_OFF = B2_OFF + 8           # rows 144..271 : w3 padded to (128, 128)
B3_OFF = W3_OFF + LANES       # row  272      : b3
SLAB_ROWS = B3_OFF + 8        # 280 rows -> 280*128*4 B ~= 140 KiB, one DMA


def pack_params(params, action_size, hidden=HIDDEN):
    """Pack (w1,b1,w2,b2,w3,b3) into one zero-padded (280,128) f32 slab."""
    w1, b1, w2, b2, w3, b3 = params
    slab = jnp.zeros((SLAB_ROWS, LANES), jnp.float32)
    slab = slab.at[W1_OFF:W1_OFF + 2, :hidden].set(w1.astype(jnp.float32))
    slab = slab.at[B1_OFF, :hidden].set(b1.astype(jnp.float32))
    slab = slab.at[W2_OFF:W2_OFF + hidden, :hidden].set(w2.astype(jnp.float32))
    slab = slab.at[B2_OFF, :hidden].set(b2.astype(jnp.float32))
    slab = slab.at[W3_OFF:W3_OFF + hidden, :action_size].set(w3.astype(jnp.float32))
    slab = slab.at[B3_OFF, :action_size].set(b3.astype(jnp.float32))
    return slab


# ---------------------------------------------------------------------------
# Kernel: MLP + mask + log_softmax + Gumbel-max sampling, all fused.
# ---------------------------------------------------------------------------
def actor_kernel(xin_ref, gum_ref, p_ref,
                 logits_ref, logp_ref, action_ref, *, action_size):
    n, lanes = logits_ref.shape
    f32 = jnp.float32

    # ---- parameter views from the single packed slab (zero-cost slices) ----
    w1r0 = p_ref[W1_OFF:W1_OFF + 1, :]          # (1, 128)
    w1r1 = p_ref[W1_OFF + 1:W1_OFF + 2, :]      # (1, 128)
    b1 = p_ref[B1_OFF:B1_OFF + 1, :]            # (1, 128)
    w2 = p_ref[W2_OFF:W2_OFF + lanes, :]        # (128, 128), rows>=16 are zero
    b2 = p_ref[B2_OFF:B2_OFF + 1, :]            # (1, 128)
    w3 = p_ref[W3_OFF:W3_OFF + lanes, :]        # (128, 128)
    b3 = p_ref[B3_OFF:B3_OFF + 1, :]            # (1, 128)

    # ---- packed per-row inputs: [obs0, obs1, in_coalition, under_med] ----
    x0 = xin_ref[:, 0:1]                         # (n, 1)
    x1 = xin_ref[:, 1:2]                         # (n, 1)
    coal = xin_ref[:, 2:3]                       # (n, 1)
    um = xin_ref[:, 3:4]                         # (n, 1)  runtime under_med flag

    # ---- layer 1 on the VPU: K=2 -> two broadcast FMAs, no MXU round-trip ----
    h1 = jnp.maximum(x0 * w1r0 + x1 * w1r1 + b1, f32(0.0))      # (n, 128)

    # ---- layers 2/3 on the MXU (zero-padded, fully lane-dense) ----
    h2 = jnp.maximum(
        jnp.dot(h1, w2, preferred_element_type=f32) + b2, f32(0.0))
    logits = jnp.dot(h2, w3, preferred_element_type=f32) + b3    # (n, 128)

    # ---- action masking (under_med is a per-row broadcast flag) ----
    col = jax.lax.broadcasted_iota(jnp.int32, (n, lanes), 1)
    is_last = col == (action_size - 1)
    is_pad = col >= action_size
    under_med = um > f32(0.5)
    # Robust comparisons (> 0.5 / < -0.5) instead of exact float equality.
    coal_mask = jnp.logical_or(
        jnp.logical_and(coal > f32(0.5), jnp.logical_not(is_last)),
        jnp.logical_and(coal < f32(-0.5), is_last))
    mask = jnp.logical_or(is_pad, jnp.logical_and(under_med, coal_mask))
    neg_inf = f32(-jnp.inf)
    logits = jnp.where(mask, neg_inf, logits)
    logits_ref[...] = logits

    # ---- fused log_softmax (each row always has >= 1 finite entry) ----
    row_max = jnp.max(logits, axis=-1, keepdims=True)
    z = logits - row_max
    lse = jnp.log(jnp.sum(jnp.exp(z), axis=-1, keepdims=True))
    logp_ref[...] = z - lse

    # ---- fused Gumbel-max categorical sampling (noise from wrapper) ----
    scores = logits + gum_ref[...]               # -inf lanes stay -inf
    best = jnp.max(scores, axis=-1, keepdims=True)
    idx = jnp.where(scores >= best, col, lanes)
    action = jnp.min(idx, axis=-1, keepdims=True)                # (n, 1) int32
    action_ref[...] = jnp.broadcast_to(action, (n, lanes))       # lane-dense store


def _vmem_full(shape):
    return pl.BlockSpec(shape, lambda: (0,) * len(shape))


def _actor_call(xin, gumbel, packed, *, n, action_size):
    return pl.pallas_call(
        functools.partial(actor_kernel, action_size=action_size),
        out_shape=(
            jax.ShapeDtypeStruct((n, LANES), jnp.float32),   # masked logits
            jax.ShapeDtypeStruct((n, LANES), jnp.float32),   # log_probs
            jax.ShapeDtypeStruct((n, LANES), jnp.int32),     # sampled action
        ),
        in_specs=[
            _vmem_full(xin.shape),       # obs + coalition + under_med flag
            _vmem_full(gumbel.shape),    # gumbel noise
            _vmem_full(packed.shape),    # packed params
        ],
        out_specs=(
            _vmem_full((n, LANES)),
            _vmem_full((n, LANES)),
            _vmem_full((n, LANES)),
        ),
    )(xin, gumbel, packed)


@functools.partial(jax.jit, static_argnames=("action_size",))
def actor_forward(obs, in_coalition, packed_params, under_med, key, *, action_size):
    """Single compiled path for both under_med modes (runtime flag)."""
    n = obs.shape[0]
    um_col = jnp.broadcast_to(
        jnp.asarray(under_med, jnp.float32).reshape(1, 1), (n, 1))
    xin = jnp.concatenate(
        [obs.astype(jnp.float32),
         in_coalition.reshape(n, 1).astype(jnp.float32),
         um_col], axis=1)                                         # (n, 4)
    gumbel = jax.random.gumbel(key, (n, LANES), jnp.float32)      # (n, 128)
    logits_full, logp_full, action_full = _actor_call(
        xin, gumbel, packed_params, n=n, action_size=action_size)
    a = action_size
    return action_full[:, 0], logp_full[:, :a], logits_full[:, :a]


# ---------------------------------------------------------------------------
# Parameter init + pure-JAX reference (for correctness checking).
# ---------------------------------------------------------------------------
def init_params(key, action_size, hidden=HIDDEN, in_dim=2):
    ks = jax.random.split(key, 6)

    def lin(kw, kb, fan_in, fan_out):
        bound = 1.0 / jnp.sqrt(jnp.float32(fan_in))
        w = jax.random.uniform(kw, (fan_in, fan_out), jnp.float32, -bound, bound)
        b = jax.random.uniform(kb, (fan_out,), jnp.float32, -bound, bound)
        return w, b

    w1, b1 = lin(ks[0], ks[1], in_dim, hidden)        # Linear(2, 16)
    w2, b2 = lin(ks[2], ks[3], hidden, hidden)        # Linear(16, 16)
    w3, b3 = lin(ks[4], ks[5], hidden, action_size)   # Linear(16, action_size)
    return (w1, b1, w2, b2, w3, b3)


def ref_logits(obs, coal, params, under_med, a):
    w1, b1, w2, b2, w3, b3 = params
    hp = jax.lax.Precision.HIGHEST
    h1 = jnp.maximum(jnp.dot(obs, w1, precision=hp) + b1, 0.0)
    h2 = jnp.maximum(jnp.dot(h1, w2, precision=hp) + b2, 0.0)
    lg = jnp.dot(h2, w3, precision=hp) + b3
    if under_med:
        cols = jnp.arange(a)
        lg = jnp.where((coal[:, None] > 0.5) & (cols != a - 1), -jnp.inf, lg)
        lg = jnp.where((coal[:, None] < -0.5) & (cols == a - 1), -jnp.inf, lg)
    return lg


if __name__ == "__main__":
    key = jax.random.PRNGKey(0)
    k_obs, k_coal, k_param, k_sample = jax.random.split(key, 4)

    N = 8             # number of agents (batch)
    ACTION_SIZE = 3   # action_size
    STATE_SIZE = 2    # obs feature dim (Linear(2, 16) input)

    obs = jax.random.normal(k_obs, (N, STATE_SIZE), jnp.float32)
    in_coalition = jax.random.randint(k_coal, (N,), -1, 2).astype(jnp.float32)

    params = init_params(k_param, ACTION_SIZE)
    packed = pack_params(params, ACTION_SIZE)

    # Both under_med modes through the same compiled kernel.
    act_t, logp_t, logits_t = actor_forward(
        obs, in_coalition, packed, True, k_sample, action_size=ACTION_SIZE)
    act_f, logp_f, logits_f = actor_forward(
        obs, in_coalition, packed, False, k_sample, action_size=ACTION_SIZE)
    jax.block_until_ready((act_t, logp_t, logits_t, act_f, logp_f, logits_f))

    # Numerical check against a pure-JAX reference (handles -inf positions).
    ref_t = ref_logits(obs, in_coalition, params, True, ACTION_SIZE)
    ref_f = ref_logits(obs, in_coalition, params, False, ACTION_SIZE)
    assert bool(jnp.allclose(logits_t, ref_t, atol=1e-3, rtol=1e-3))
    assert bool(jnp.allclose(logits_f, ref_f, atol=1e-3, rtol=1e-3))

    # log_probs form a valid distribution.
    assert bool(jnp.allclose(jnp.sum(jnp.exp(logp_t), -1), 1.0, atol=1e-4))
    assert bool(jnp.allclose(jnp.sum(jnp.exp(logp_f), -1), 1.0, atol=1e-4))

    # Masking forces / forbids the last action under_med.
    coal1 = in_coalition > 0.5
    assert bool(jnp.all(jnp.where(coal1, act_t == ACTION_SIZE - 1, True)))
    coalm1 = in_coalition < -0.5
    assert bool(jnp.all(jnp.where(coalm1, act_t != ACTION_SIZE - 1, True)))
    # Sampled actions are always in range.
    assert bool(jnp.all((act_t >= 0) & (act_t < ACTION_SIZE)))
    assert bool(jnp.all((act_f >= 0) & (act_f < ACTION_SIZE)))

    print("KERNEL_OK")
</pallas_src>

<mosaic_0001>
module attributes {stable_mosaic.version = 11 : i64} {
  func.func @actor_kernel(%arg0: memref<8x4xf32, #tpu.memory_space<vmem>>, %arg1: memref<8x128xf32, #tpu.memory_space<vmem>>, %arg2: memref<280x128xf32, #tpu.memory_space<vmem>>, %arg3: memref<8x128xf32, #tpu.memory_space<vmem>>, %arg4: memref<8x128xf32, #tpu.memory_space<vmem>>, %arg5: memref<8x128xi32, #tpu.memory_space<vmem>>) attributes {dimension_semantics = [], scalar_prefetch = 0 : i64, scratch_operands = 0 : i64, tpu.core_type = #tpu.core_type<tc>} {
    %c0 = arith.constant 0 : index
    %c0_0 = arith.constant 0 : index
    %0 = vector.load %arg2[%c0, %c0_0] : memref<280x128xf32, #tpu.memory_space<vmem>>, vector<1x128xf32>
    %c1 = arith.constant 1 : index
    %c0_1 = arith.constant 0 : index
    %1 = vector.load %arg2[%c1, %c0_1] : memref<280x128xf32, #tpu.memory_space<vmem>>, vector<1x128xf32>
    %c2 = arith.constant 2 : index
    %c0_2 = arith.constant 0 : index
    %2 = vector.load %arg2[%c2, %c0_2] : memref<280x128xf32, #tpu.memory_space<vmem>>, vector<1x128xf32>
    %c8 = arith.constant 8 : index
    %c0_3 = arith.constant 0 : index
    %3 = vector.load %arg2[%c8, %c0_3] : memref<280x128xf32, #tpu.memory_space<vmem>>, vector<128x128xf32>
    %c136 = arith.constant 136 : index
    %c0_4 = arith.constant 0 : index
    %4 = vector.load %arg2[%c136, %c0_4] : memref<280x128xf32, #tpu.memory_space<vmem>>, vector<1x128xf32>
    %c144 = arith.constant 144 : index
    %c0_5 = arith.constant 0 : index
    %5 = vector.load %arg2[%c144, %c0_5] : memref<280x128xf32, #tpu.memory_space<vmem>>, vector<128x128xf32>
    %c272 = arith.constant 272 : index
    %c0_6 = arith.constant 0 : index
    %6 = vector.load %arg2[%c272, %c0_6] : memref<280x128xf32, #tpu.memory_space<vmem>>, vector<1x128xf32>
    %c0_7 = arith.constant 0 : index
    %c0_8 = arith.constant 0 : index
    %7 = vector.load %arg0[%c0_7, %c0_8] : memref<8x4xf32, #tpu.memory_space<vmem>>, vector<8x1xf32>
    %c0_9 = arith.constant 0 : index
    %c1_10 = arith.constant 1 : index
    %8 = vector.load %arg0[%c0_9, %c1_10] : memref<8x4xf32, #tpu.memory_space<vmem>>, vector<8x1xf32>
    %c0_11 = arith.constant 0 : index
    %c2_12 = arith.constant 2 : index
    %9 = vector.load %arg0[%c0_11, %c2_12] : memref<8x4xf32, #tpu.memory_space<vmem>>, vector<8x1xf32>
    %c0_13 = arith.constant 0 : index
    %c3 = arith.constant 3 : index
    %10 = vector.load %arg0[%c0_13, %c3] : memref<8x4xf32, #tpu.memory_space<vmem>>, vector<8x1xf32>
    %11 = vector.broadcast %7 : vector<8x1xf32> to vector<8x128xf32>
    %12 = vector.broadcast %0 : vector<1x128xf32> to vector<8x128xf32>
    %13 = arith.mulf %11, %12 : vector<8x128xf32>
    %14 = vector.broadcast %8 : vector<8x1xf32> to vector<8x128xf32>
    %15 = vector.broadcast %1 : vector<1x128xf32> to vector<8x128xf32>
    %16 = arith.mulf %14, %15 : vector<8x128xf32>
    %17 = arith.addf %13, %16 : vector<8x128xf32>
    %18 = vector.broadcast %2 : vector<1x128xf32> to vector<8x128xf32>
    %19 = arith.addf %17, %18 : vector<8x128xf32>
    %cst = arith.constant 0.000000e+00 : f32
    %20 = vector.broadcast %cst : f32 to vector<8x128xf32>
    %21 = arith.maximumf %19, %20 : vector<8x128xf32>
    %cst_14 = arith.constant dense<0.000000e+00> : vector<8x128xf32>
    %22 = tpu.matmul %21, %3, %cst_14 {dimension_numbers = #tpu.dot_dimension_numbers<[1], [0], [0], [1], [0, 0, 1, 1], [], []>} : vector<8x128xf32>, vector<128x128xf32>, vector<8x128xf32> -> vector<8x128xf32>
    %23 = vector.broadcast %4 : vector<1x128xf32> to vector<8x128xf32>
    %24 = arith.addf %22, %23 : vector<8x128xf32>
    %cst_15 = arith.constant 0.000000e+00 : f32
    %25 = vector.broadcast %cst_15 : f32 to vector<8x128xf32>
    %26 = arith.maximumf %24, %25 : vector<8x128xf32>
    %cst_16 = arith.constant dense<0.000000e+00> : vector<8x128xf32>
    %27 = tpu.matmul %26, %5, %cst_16 {dimension_numbers = #tpu.dot_dimension_numbers<[1], [0], [0], [1], [0, 0, 1, 1], [], []>} : vector<8x128xf32>, vector<128x128xf32>, vector<8x128xf32> -> vector<8x128xf32>
    %28 = vector.broadcast %6 : vector<1x128xf32> to vector<8x128xf32>
    %29 = arith.addf %27, %28 : vector<8x128xf32>
    %30 = tpu.iota {dimensions = array<i32: 1>} : vector<8x128xi32>
    %c2_i32 = arith.constant 2 : i32
    %31 = vector.broadcast %c2_i32 : i32 to vector<8x128xi32>
    %32 = arith.cmpi eq, %30, %31 : vector<8x128xi32>
    %c3_i32 = arith.constant 3 : i32
    %33 = vector.broadcast %c3_i32 : i32 to vector<8x128xi32>
    %34 = arith.cmpi sge, %30, %33 : vector<8x128xi32>
    %cst_17 = arith.constant 5.000000e-01 : f32
    %35 = vector.broadcast %cst_17 : f32 to vector<8x1xf32>
    %36 = arith.cmpf ogt, %10, %35 : vector<8x1xf32>
    %cst_18 = arith.constant 5.000000e-01 : f32
    %37 = vector.broadcast %cst_18 : f32 to vector<8x1xf32>
    %38 = arith.cmpf ogt, %9, %37 : vector<8x1xf32>
    %cst_19 = arith.constant dense<true> : vector<8x128xi1>
    %39 = arith.xori %32, %cst_19 : vector<8x128xi1>
    %40 = vector.broadcast %38 : vector<8x1xi1> to vector<8x128xi1>
    %41 = arith.andi %40, %39 : vector<8x128xi1>
    %cst_20 = arith.constant -5.000000e-01 : f32
    %42 = vector.broadcast %cst_20 : f32 to vector<8x1xf32>
    %43 = arith.cmpf olt, %9, %42 : vector<8x1xf32>
    %44 = vector.broadcast %43 : vector<8x1xi1> to vector<8x128xi1>
    %45 = arith.andi %44, %32 : vector<8x128xi1>
    %46 = arith.ori %41, %45 : vector<8x128xi1>
    %47 = vector.broadcast %36 : vector<8x1xi1> to vector<8x128xi1>
    %48 = arith.andi %47, %46 : vector<8x128xi1>
    %49 = arith.ori %34, %48 : vector<8x128xi1>
    %cst_21 = arith.constant 0xFF800000 : f32
    %50 = vector.broadcast %cst_21 : f32 to vector<8x128xf32>
    %51 = arith.select %49, %50, %29 : vector<8x128xi1>, vector<8x128xf32>
    %c0_22 = arith.constant 0 : index
    %c0_23 = arith.constant 0 : index
    %52 = vector.load %arg3[%c0_22, %c0_23] : memref<8x128xf32, #tpu.memory_space<vmem>>, vector<8x128xf32>
    tpu.vector_store %arg3[%c0_22, %c0_23], %51 {strides = array<i32>} : memref<8x128xf32, #tpu.memory_space<vmem>>, vector<8x128xf32>,
    %cst_24 = arith.constant dense<0xFF800000> : vector<8xf32>
    %53 = vector.multi_reduction <maximumf>, %51, %cst_24 [1] : vector<8x128xf32> to vector<8xf32>
    %54 = vector.shape_cast %53 : vector<8xf32> to vector<8x1xf32>
    %55 = vector.broadcast %54 : vector<8x1xf32> to vector<8x128xf32>
    %56 = arith.subf %51, %55 : vector<8x128xf32>
    %57 = math.exp %56 : vector<8x128xf32>
    %cst_25 = arith.constant dense<0.000000e+00> : vector<8xf32>
    %58 = vector.multi_reduction <add>, %57, %cst_25 [1] : vector<8x128xf32> to vector<8xf32>
    %59 = vector.shape_cast %58 : vector<8xf32> to vector<8x1xf32>
    %60 = math.log %59 : vector<8x1xf32>
    %61 = vector.broadcast %60 : vector<8x1xf32> to vector<8x128xf32>
    %62 = arith.subf %56, %61 : vector<8x128xf32>
    %c0_26 = arith.constant 0 : index
    %c0_27 = arith.constant 0 : index
    %63 = vector.load %arg4[%c0_26, %c0_27] : memref<8x128xf32, #tpu.memory_space<vmem>>, vector<8x128xf32>
    tpu.vector_store %arg4[%c0_26, %c0_27], %62 {strides = array<i32>} : memref<8x128xf32, #tpu.memory_space<vmem>>, vector<8x128xf32>,
    %c0_28 = arith.constant 0 : index
    %c0_29 = arith.constant 0 : index
    %64 = vector.load %arg1[%c0_28, %c0_29] : memref<8x128xf32, #tpu.memory_space<vmem>>, vector<8x128xf32>
    %65 = arith.addf %51, %64 : vector<8x128xf32>
    %cst_30 = arith.constant dense<0xFF800000> : vector<8xf32>
    %66 = vector.multi_reduction <maximumf>, %65, %cst_30 [1] : vector<8x128xf32> to vector<8xf32>
    %67 = vector.shape_cast %66 : vector<8xf32> to vector<8x1xf32>
    %68 = vector.broadcast %67 : vector<8x1xf32> to vector<8x128xf32>
    %69 = arith.cmpf oge, %65, %68 : vector<8x128xf32>
    %c128_i32 = arith.constant 128 : i32
    %70 = vector.broadcast %c128_i32 : i32 to vector<8x128xi32>
    %71 = arith.select %69, %30, %70 : vector<8x128xi1>, vector<8x128xi32>
    %cst_31 = arith.constant dense<2147483647> : vector<8xi32>
    %72 = vector.multi_reduction <minsi>, %71, %cst_31 [1] : vector<8x128xi32> to vector<8xi32>
    %73 = vector.shape_cast %72 : vector<8xi32> to vector<8x1xi32>
    %74 = vector.shape_cast %73 : vector<8x1xi32> to vector<8x1xi32>
    %75 = vector.broadcast %74 : vector<8x1xi32> to vector<8x128xi32>
    %c0_32 = arith.constant 0 : index
    %c0_33 = arith.constant 0 : index
    %76 = vector.load %arg5[%c0_32, %c0_33] : memref<8x128xi32, #tpu.memory_space<vmem>>, vector<8x128xi32>
    tpu.vector_store %arg5[%c0_32, %c0_33], %75 {strides = array<i32>} : memref<8x128xi32, #tpu.memory_space<vmem>>, vector<8x128xi32>,
    return
  }
}

</mosaic_0001>

<bundles_post_ra>
// kernel: actor_forward.1
= control target key start
LH: loop header
LB: loop body
LE: loop exit
PB: predicated region body
PF: predicated region fallthrough
CT: control target
= control target key end

     0   :  { %11 = vsyncpa [#allocation3], 0  ;;  %s467_s18 = smov [#allocation2]   ;;  %s568_s0 = inlined_call_operand.vmem [shape: f32[8,4], index: 0, kind: input, shape index: {}]   ;;  %s569_s1 = inlined_call_operand.vmem [shape: f32[8,128], index: 1, kind: input, shape index: {}]   ;;  %s570_s2 = inlined_call_operand.hbm [shape: f32[280,128], index: 2, kind: input, shape index: {}]   ;;  %s571_s3 = inlined_call_operand.vmem [shape: f32[8,128], index: 3, kind: output, shape index: {0}]   ;;  %s572_s4 = inlined_call_operand.vmem [shape: f32[8,128], index: 4, kind: output, shape index: {1}]   ;;  %s573_s5 = inlined_call_operand.vmem [shape: s32[8,128], index: 5, kind: output, shape index: {2}]  }
   0x1   :  { %s21_s19 = sshll.u32 %s467_s18, 4  ;;  %s22_s19 = int_to_ptr.vmem [resolvable:$true] %s21_s19 }
   0x2   :  { %s453_s20 = scalar_lea.vmem %s22_s19, 4480  ;;  %p458_p1 = scmp.lt.s32.totalorder %s22_s19, %s22_s19 }
   0x3   :  { %p454_p0 = scmp.ne.s32.totalorder %s22_s19, %s453_s20  ;;  %p459_p2 = scmp.lt.s32.totalorder %s453_s20, %s453_s20 }
   0x5   :  { %p460_p3 = por %p459_p2, %p458_p1 }
   0x7   :  { %p461_p4 = pnand %p460_p3, %p454_p0 }
   0x9   :  { %464 = shalt.err (!%p461_p4)
}
   0xa   :  { %s468_s21 = smov 128   ;;  %s469_s22 = smov 8  }
   0xb   :  { %27 = dma.hbm_to_vmem [thread:$0]  %s570_s2, 4480, %s22_s19, [#allocation3], %s468_s21, %s468_s21, %s469_s22  }
   0xc   :  { %465 = dma.done.wait [#allocation3], 4480  }
   0xd   :  { %466 = vsyncadd [#allocation3], 4294962816  ;;  %v470_v0 = vmov 0   ;;  %v471_v1 = vmov 0.0   ;;  %v516_v2 = vld [vmem:[%s568_s0] sm:$0xff]  ;;  %v48_v4 = vld [vmem:[#allocation2 + $0x78] sm:$0xff]  ;;  %v244_v55 = vlaneseq }
   0xe   :  { %436 = vset.pattern.permute.xlu0 %v470_v0  ;;  %356 = vmatprep.subr.mxu0 %v471_v1  ;;  %v49_v3 = vld [vmem:[#allocation2 + $0x80] sm:$0xff]  ;;  %v47_v5 = vld [vmem:[#allocation2 + $0x70] sm:$0xff]  ;;  %v46_v6 = vld [vmem:[#allocation2 + $0x68] sm:$0xff]  ;;  %v472_v7 = vmov 1   ;;  %vm473_vm0 = vmmov 0   ;;  %vm248_vm1 = vcmp.gt.f32.partialorder %v516_v2, 0.5 }
   0xf   :  { %391 = vmatprep.subr.mxu1 %v471_v1  ;;  %71 = vperm.xlu0 %436, %v516_v2   ;;  %v45_v8 = vld [vmem:[#allocation2 + $0x60] sm:$0xff]  ;;  %v44_v9 = vld [vmem:[#allocation2 + $0x58] sm:$0xff]  ;;  %v43_v10 = vld [vmem:[#allocation2 + $0x50] sm:$0xff]  ;;  %vm256_vm2 = vcmp.lt.f32.partialorder %v516_v2, -0.5  ;;  %v474_v46 = vmov 2   ;;  %v250_v47 = vsel %vm248_vm1, 1, %v470_v0 }
  0x10   :  { %357 = vmatpush3.msra.mxu0 %v49_v3  ;;  %388 = vmatprep.mubr.msk.f32.mxu0 %vm473_vm0, %v471_v1  ;;  %v66_v11 = vld [vmem:[#allocation2 + $0x108] sm:$0xff]  ;;  %v65_v12 = vld [vmem:[#allocation2 + $0x100] sm:$0xff]  ;;  %v64_v14 = vld [vmem:[#allocation2 + $0xf8] sm:$0xff]  ;;  %v475_v48 = vmov 3   ;;  %v257_v49 = vsel %vm256_vm2, 1, %v470_v0  ;;  %v245_v57 = vand.u32 127, %v244_v55 }
  0x11   :  { %358 = vmatprep.subr.mxu0 %v471_v1  ;;  %423 = vmatprep.mubr.msk.f32.mxu1 %vm473_vm0, %v471_v1  ;;  %v42_v13 = vld [vmem:[#allocation2 + $0x48] sm:$0xff]  ;;  %v41_v15 = vld [vmem:[#allocation2 + $0x40] sm:$0xff]  ;;  %v63_v16 = vld [vmem:[#allocation2 + $0xf0] sm:$0xff]  ;;  %vm476_vm4 = vmmov 1  }
  0x12   :  { %359 = vmatpush3.msra.mxu0 %v48_v4  ;;  %392 = vmatpush3.msra.mxu1 %v66_v11  ;;  %v40_v17 = vld [vmem:[#allocation2 + $0x38] sm:$0xff]  ;;  %v62_v18 = vld [vmem:[#allocation2 + $0xe8] sm:$0xff]  ;;  %v39_v19 = vld [vmem:[#allocation2 + $0x30] sm:$0xff]  ;;  %vm246_vm3 = vcmp.eq.s32.totalorder %v245_v57, 2  ;;  %vm247_vm12 = vcmp.ge.s32.totalorder %v245_v57, 3 }
  0x13   :  { %360 = vmatprep.subr.mxu0 %v471_v1  ;;  %437 = vset.pattern.permute.xlu0 %v472_v7  ;;  %v61_v20 = vld [vmem:[#allocation2 + $0xe0] sm:$0xff]  ;;  %v38_v21 = vld [vmem:[#allocation2 + $0x28] sm:$0xff]  ;;  %v60_v22 = vld [vmem:[#allocation2 + $0xd8] sm:$0xff] }
  0x14   :  { %361 = vmatpush3.msra.mxu0 %v47_v5  ;;  %80 = vperm.xlu0 %437, %v516_v2   ;;  %v37_v23 = vld [vmem:[#allocation2 + $0x20] sm:$0xff]  ;;  %v59_v24 = vld [vmem:[#allocation2 + $0xd0] sm:$0xff]  ;;  %v36_v25 = vld [vmem:[#allocation2 + $0x18] sm:$0xff] }
  0x15   :  { %362 = vmatprep.subr.mxu0 %v471_v1  ;;  %393 = vmatprep.subr.mxu1 %v471_v1  ;;  %v58_v26 = vld [vmem:[#allocation2 + $0xc8] sm:$0xff]  ;;  %v35_v27 = vld [vmem:[#allocation2 + $0x10] sm:$0xff]  ;;  %v57_v28 = vld [vmem:[#allocation2 + $0xc0] sm:$0xff] }
  0x16   :  { %363 = vmatpush3.msra.mxu0 %v46_v6  ;;  %394 = vmatpush3.msra.mxu1 %v65_v12  ;;  %v34_v29 = vld [vmem:[#allocation2 + $0x8] sm:$0xff]  ;;  %v56_v30 = vld [vmem:[#allocation2 + $0xb8] sm:$0xff]  ;;  %v55_v31 = vld [vmem:[#allocation2 + $0xb0] sm:$0xff] }
  0x17   :  { %364 = vmatprep.subr.mxu0 %v471_v1  ;;  %395 = vmatprep.subr.mxu1 %v471_v1  ;;  %v54_v32 = vld [vmem:[#allocation2 + $0xa8] sm:$0xff]  ;;  %v317_v34 = vld [vmem:[#allocation2] ss:$0 sm:$0xff]  ;;  %v318_v35 = vld [vmem:[#allocation2 + $0x1] ss:$0 sm:$0xff] }
  0x18   :  { %365 = vmatpush3.msra.mxu0 %v45_v8  ;;  %396 = vmatpush3.msra.mxu1 %v64_v14  ;;  %v319_v39 = vld [vmem:[#allocation2 + $0x2] ss:$0 sm:$0xff]  ;;  %v52_v44 = vld [vmem:[#allocation2 + $0x98] sm:$0xff]  ;;  %v51_v45 = vld [vmem:[#allocation2 + $0x90] sm:$0xff] }
  0x19   :  { %366 = vmatprep.subr.mxu0 %v471_v1  ;;  %397 = vmatprep.subr.mxu1 %v471_v1  ;;  %v53_v43 = vld [vmem:[#allocation2 + $0xa0] sm:$0xff]  ;;  %v320_v50 = vld [vmem:[#allocation2 + $0x88] ss:$0 sm:$0xff]  ;;  %vm249_vm5 = vmxor %vm246_vm3, %vm476_vm4 }
  0x1a   :  { %367 = vmatpush3.msra.mxu0 %v44_v9  ;;  %398 = vmatpush3.msra.mxu1 %v63_v16  ;;  %v321_v60 = vld [vmem:[#allocation2 + $0x110] ss:$0 sm:$0xff]  ;;  %v283_v63 = vld [vmem:[%s569_s1] sm:$0xff] }
  0x1b   :  { %368 = vmatprep.subr.mxu0 %v471_v1  ;;  %399 = vmatprep.subr.mxu1 %v471_v1 }
  0x1c   :  { %369 = vmatpush3.msra.mxu0 %v43_v10  ;;  %400 = vmatpush3.msra.mxu1 %v62_v18 }
  0x1d   :  { %370 = vmatprep.subr.mxu0 %v471_v1  ;;  %401 = vmatprep.subr.mxu1 %v471_v1 }
  0x1e   :  { %371 = vmatpush3.msra.mxu0 %v42_v13  ;;  %402 = vmatpush3.msra.mxu1 %v61_v20 }
  0x1f   :  { %372 = vmatprep.subr.mxu0 %v471_v1  ;;  %403 = vmatprep.subr.mxu1 %v471_v1 }
  0x20   :  { %373 = vmatpush3.msra.mxu0 %v41_v15  ;;  %404 = vmatpush3.msra.mxu1 %v60_v22 }
  0x21   :  { %374 = vmatprep.subr.mxu0 %v471_v1  ;;  %405 = vmatprep.subr.mxu1 %v471_v1 }
  0x22   :  { %375 = vmatpush3.msra.mxu0 %v40_v17  ;;  %406 = vmatpush3.msra.mxu1 %v59_v24 }
  0x23   :  { %376 = vmatprep.subr.mxu0 %v471_v1  ;;  %407 = vmatprep.subr.mxu1 %v471_v1 }
  0x24   :  { %377 = vmatpush3.msra.mxu0 %v39_v19  ;;  %408 = vmatpush3.msra.mxu1 %v58_v26 }
  0x25   :  { %378 = vmatprep.subr.mxu0 %v471_v1  ;;  %409 = vmatprep.subr.mxu1 %v471_v1 }
  0x26   :  { %379 = vmatpush3.msra.mxu0 %v38_v21  ;;  %410 = vmatpush3.msra.mxu1 %v57_v28 }
  0x27   :  { %380 = vmatprep.subr.mxu0 %v471_v1  ;;  %411 = vmatprep.subr.mxu1 %v471_v1 }
  0x28   :  { %381 = vmatpush3.msra.mxu0 %v37_v23  ;;  %412 = vmatpush3.msra.mxu1 %v56_v30 }
  0x29   :  { %382 = vmatprep.subr.mxu0 %v471_v1  ;;  %413 = vmatprep.subr.mxu1 %v471_v1 }
  0x2a   :  { %383 = vmatpush3.msra.mxu0 %v36_v25  ;;  %414 = vmatpush3.msra.mxu1 %v55_v31 }
  0x2b   :  { %384 = vmatprep.subr.mxu0 %v471_v1  ;;  %415 = vmatprep.subr.mxu1 %v471_v1 }
  0x2c   :  { %385 = vmatpush3.msra.mxu0 %v35_v27  ;;  %416 = vmatpush3.msra.mxu1 %v54_v32 }
  0x2d   :  { %386 = vmatprep.subr.mxu0 %v471_v1  ;;  %417 = vmatprep.subr.mxu1 %v471_v1 }
  0x2e   :  { %387 = vmatpush3.msra.mxu0 %v34_v29  ;;  %418 = vmatpush3.msra.mxu1 %v53_v43 }
  0x2f   :  { %419 = vmatprep.subr.mxu1 %v471_v1  ;;  %438 = vset.pattern.permute.xlu1 %v474_v46 }
  0x30   :  { %420 = vmatpush3.msra.mxu1 %v52_v44  ;;  %440 = vset.pattern.permute.xlu0 %v475_v48 }
  0x31   :  { %421 = vmatprep.subr.mxu1 %v471_v1  ;;  %252 = vperm.xlu1 %438, %v250_v47  }
  0x32   :  { %422 = vmatpush3.msra.mxu1 %v51_v45 }
  0x35   :  { %259 = vperm.xlu1 %438, %v257_v49  }
  0x39   :  { %439 = vset.pattern.permute.xlu1 %v475_v48 }
  0x3a   :  { %265 = vperm.xlu1 %439, %v250_v47  }
  0x8a   :  { %v72_v33 = vpop.permute.xlu0 %71 }
  0x8b   :  { %v78_v37 = vmul.f32 %v317_v34, %v72_v33 }
  0x8f   :  { %v81_v36 = vpop.permute.xlu0 %80 }
  0x90   :  { %v87_v38 = vmul.f32 %v318_v35, %v81_v36 }
  0x92   :  { %v88_v40 = vadd.f32 %v87_v38, %v78_v37 }
  0x94   :  { %v93_v41 = vadd.f32 %v319_v39, %v88_v40 }
  0x96   :  { %v94_v42 = vmax.f32 %v93_v41, 0.0 }
  0x98   :  { %389 = vmatmul.mubr.f32.vlgmr.msra.gmra.mxu0 %v94_v42 }
  0xac   :  { %v253_v56 = vpop.permute.xlu1 %252 }
  0xad   :  { %vm254_vm6 = vcmp.eq.s32.totalorder %v253_v56, 1 }
  0xae   :  { %vm255_vm8 = vmand %vm254_vm6, %vm249_vm5 }
  0xb0   :  { %v260_v58 = vpop.permute.xlu1 %259 }
  0xb1   :  { %vm261_vm7 = vcmp.eq.s32.totalorder %v260_v58, 1 }
  0xb2   :  { %vm262_vm9 = vmand %vm261_vm7, %vm246_vm3 }
  0xb3   :  { %vm263_vm10 = vmor %vm255_vm8, %vm262_vm9 }
  0xb5   :  { %v266_v59 = vpop.permute.xlu1 %265 }
  0xb6   :  { %vm267_vm11 = vcmp.eq.s32.totalorder %v266_v59, 1 }
  0xb7   :  { %vm268_vm13 = vmand %vm267_vm11, %vm263_vm10 }
  0xb8   :  { %vm269_vm14 = vmor %vm247_vm12, %vm268_vm13 }
 0x158   :  { %v165_v51 = vpop.f32.mrf.mxu0 }
 0x159   :  { %v166_v52 = vadd.f32 %v320_v50, %v165_v51 }
 0x15a   :  { %v390_v53 = vpop.f32.mrf.mxu0 }
 0x15b   :  { %v169_v54 = vmax.f32 %v166_v52, 0.0 }
 0x15d   :  { %424 = vmatmul.mubr.f32.vlgmr.msra.gmra.mxu1 %v169_v54 }
 0x21d   :  { %v240_v61 = vpop.f32.mrf.mxu1 }
 0x21e   :  { %v241_v62 = vadd.f32 %v321_v60, %v240_v61 }
 0x21f   :  { %v425_v0 = vpop.f32.mrf.mxu1 }
 0x220   :  { %v270_v1 = vsel %vm269_vm14, -inf, %v241_v62 }
 0x221   :  { %271 = vst [vmem:[%s571_s3] sm:$0xff] %v270_v1  ;;  %272 = vmax.xlane.f32.xlu1 %v270_v1  ;;  %v284_v2 = vadd.f32 %v283_v63, %v270_v1 }
 0x223   :  { %285 = vmax.xlane.f32.xlu0 %v284_v2 }
 0x2aa   :  { %v273_v3 = vpop.xlane.xlu1 %272 }
 0x2ab   :  { %v274_v4 = vsub.f32 %v270_v1, %v273_v3 }
 0x2ac   :  { %v286_v5 = vpop.xlane.xlu0 %285 }
 0x2ad   :  { %v275_v6 = vmul.f32 1.442695, %v274_v4  ;;  %vm287_vm15 = vcmp.ge.f32.partialorder %v284_v2, %v286_v5 }
 0x2ae   :  { %v288_v7 = vsel %vm287_vm15, %v245_v57, 128 }
 0x2af   :  { %441 = vpow2.f32 %v275_v6  ;;  %v290_v8 = vshra.s32 %v288_v7, 16  ;;  %v289_v11 = vand.u32 65535, %v288_v7 }
 0x2b1   :  { %v292_v9 = vcvt.s32.f32 %v290_v8  ;;  %v291_v13 = vcvt.s32.f32 %v289_v11 }
 0x2b3   :  { %293 = vmin.xlane.f32.xlu0 %v292_v9 }
 0x2bc   :  { %v442_v10 = vpop.eup %441 }
 0x2bd   :  { %277 = vadd.xlane.f32.xlu0 %v442_v10 }
 0x33c   :  { %v294_v12 = vpop.xlane.xlu0 %293 }
 0x33d   :  { %vm295_vm0 = vcmp.eq.f32.partialorder %v292_v9, %v294_v12  ;;  %v300_v19 = vcvt.f32.s32 %v294_v12 }
 0x33e   :  { %v296_v14 = vsel %vm295_vm0, %v291_v13, inf }
 0x33f   :  { %297 = vmin.xlane.f32.xlu1 %v296_v14  ;;  %v301_v21 = vshll.u32 %v300_v19, 16 }
 0x346   :  { %v278_v15 = vpop.xlane.xlu0 %277 }
 0x347   :  { %443 = vlog2.f32 %v278_v15 }
 0x354   :  { %v444_v16 = vpop.eup %443 }
 0x355   :  { %v280_v17 = vmul.f32 0.6931472, %v444_v16 }
 0x357   :  { %v281_v18 = vsub.f32 %v274_v4, %v280_v17 }
 0x359   :  { %282 = vst [vmem:[%s572_s4] sm:$0xff] %v281_v18 }
 0x3c8   :  { %v298_v20 = vpop.xlane.xlu1 %297 }
 0x3c9   :  { %v299_v22 = vcvt.f32.s32 %v298_v20 }
 0x3cb   :  { %v302_v23 = vadd.s32 %v301_v21, %v299_v22 }
 0x3cd   :  { %303 = vst [vmem:[%s573_s5] sm:$0xff] %v302_v23 }
 0x3ce   :  { %316 = vsyncpa [#allocation3], 1 }

</bundles_post_ra>
